<compile_context>
chip_gen: v7x
topology: tpu7x:2x2x1
jax: 0.10.0
libtpu: 0.0.40
codegen_flags: <defaults>
</compile_context>

<pallas_src>
import math
from functools import partial

import jax
import jax.numpy as jnp
from jax.experimental import pallas as pl
from jax.experimental.pallas import tpu as pltpu


def _round_up(x, m):
    return ((x + m - 1) // m) * m


def _wce_partial_kernel(preds_ref, labels_ref, counts_ref, nll_ref, *, c_tile):
    """Accumulate per-class masked counts and per-class NLL sums for one (row, vocab) tile."""
    j = pl.program_id(0)  # vocab tile  (parallel)
    i = pl.program_id(1)  # row tile    (reduction / arbitrary)

    @pl.when(i == 0)
    def _init():
        counts_ref[...] = jnp.zeros_like(counts_ref)
        nll_ref[...] = jnp.zeros_like(nll_ref)

    preds = preds_ref[...].astype(jnp.float32)   # [tile_n, c_tile] (cast in-kernel, native dtype in HBM)
    labels = labels_ref[...]                     # [tile_n, 1] int32; -1 marks padded / masked rows

    class_ids = j * c_tile + jax.lax.broadcasted_iota(jnp.int32, preds.shape, 1)
    sel = labels == class_ids                    # [tile_n, c_tile]; all-false for padded rows

    counts_ref[...] += jnp.sum(sel.astype(jnp.float32), axis=0, keepdims=True)
    nll_ref[...] += jnp.sum(jnp.where(sel, -preds, 0.0), axis=0, keepdims=True)


def weighted_cross_entropy(preds, labels, pad_mask=None, *, norm="min",
                           tile_n=512, c_tile_max=2048, eps=1e-8):
    """preds: [..., C] log-probs, labels: [...] int, pad_mask: [...] bool (True = valid)."""
    # TODO(synk): is_sequential=False branch of the PyTorch module references an undefined
    # variable (`bin`) and is not implemented; only the sequential path is kernelized.
    assert norm in ("min", "max")
    c = preds.shape[-1]
    n = math.prod(preds.shape[:-1])

    preds2 = preds.reshape(n, c)                       # keep native dtype (bf16 stays bf16 in HBM)
    labels_flat = labels.reshape(n).astype(jnp.int32)
    if pad_mask is None:
        mask_flat = jnp.ones((n,), jnp.bool_)
    else:
        mask_flat = pad_mask.reshape(n).astype(jnp.bool_)
    labels_m = jnp.where(mask_flat, labels_flat, -1).reshape(n, 1)

    # ---- row tiling (pad N up to a multiple of the tile; pad rows get label -1) ----
    tn = min(_round_up(tile_n, 8), _round_up(n, 8))
    n_pad = _round_up(n, tn)
    if n_pad != n:
        preds2 = jnp.pad(preds2, ((0, n_pad - n), (0, 0)))
        labels_m = jnp.pad(labels_m, ((0, n_pad - n), (0, 0)), constant_values=-1)

    # ---- vocab tiling (only for large C; padded classes have count 0 and are sliced off) ----
    c_pad = c
    if c > c_tile_max:
        c_pad = _round_up(c, 128)
        ct = c_tile_max if c_pad % c_tile_max == 0 else 128
        if c_pad != c:
            preds2 = jnp.pad(preds2, ((0, 0), (0, c_pad - c)))
    else:
        ct = c
    grid = (c_pad // ct, n_pad // tn)

    # VMEM budget: double-buffered preds tile + lane-padded labels tile + tiny outputs.
    itemsize = preds2.dtype.itemsize
    vmem_bytes = 2 * (tn * ct * itemsize + tn * 128 * 4) + 4 * 2 * ct * 4 + (2 << 20)
    vmem_limit = int(min(max(vmem_bytes, 8 << 20), 32 << 20))

    counts, nll_sum = pl.pallas_call(
        partial(_wce_partial_kernel, c_tile=ct),
        out_shape=(jax.ShapeDtypeStruct((1, c_pad), jnp.float32),
                   jax.ShapeDtypeStruct((1, c_pad), jnp.float32)),
        grid=grid,
        in_specs=[
            pl.BlockSpec((tn, ct), lambda j, i: (i, j)),
            pl.BlockSpec((tn, 1), lambda j, i: (i, 0)),
        ],
        out_specs=(
            pl.BlockSpec((1, ct), lambda j, i: (0, j)),
            pl.BlockSpec((1, ct), lambda j, i: (0, j)),
        ),
        compiler_params=pltpu.CompilerParams(
            dimension_semantics=("parallel", "arbitrary"),
            vmem_limit_bytes=vmem_limit,
        ),
    )(preds2, labels_m)

    counts = counts[0, :c]
    nll_sum = nll_sum[0, :c]

    # ---- O(C) finalize in plain JAX (exactly F.nll_loss with per-class weights) ----
    # TODO(synk): torch.bincount returns a vector of length max(label)+1 (not C); this
    # matches it whenever all C classes can appear, which nll_loss(weight=...) requires anyway.
    norm_fn = jnp.min if norm == "min" else jnp.max
    w = norm_fn(counts) / (counts + eps)
    return jnp.sum(w * nll_sum) / jnp.sum(w * counts)


def _reference(preds, labels, pad_mask, norm, eps=1e-8):
    """Pure-JAX reference matching F.nll_loss(preds[mask], labels[mask], weight=w)."""
    c = preds.shape[-1]
    p = preds.reshape(-1, c).astype(jnp.float32)
    y = labels.reshape(-1)
    m = pad_mask.reshape(-1).astype(jnp.float32)
    counts = jnp.sum(jax.nn.one_hot(y, c, dtype=jnp.float32) * m[:, None], axis=0)
    norm_fn = jnp.min if norm == "min" else jnp.max
    w = norm_fn(counts) / (counts + eps)
    nll = -jnp.take_along_axis(p, y[:, None], axis=1)[:, 0]
    sw = w[y] * m
    return jnp.sum(sw * nll) / jnp.sum(sw)


if __name__ == "__main__":
    key = jax.random.PRNGKey(0)

    def make_inputs(k, b, t, c, lengths):
        logits = jax.random.normal(k, (b, t, c), dtype=jnp.float32)
        preds = jax.nn.log_softmax(logits, axis=-1)          # nll_loss expects log-probs
        # Deterministic labels that guarantee class coverage for norm='min' configs.
        labels = (jnp.arange(b * t, dtype=jnp.int32) % c).reshape(b, t)
        pad_mask = jnp.arange(t)[None, :] < jnp.asarray(lengths, dtype=jnp.int32)[:, None]
        return preds, labels, pad_mask

    configs = [
        # (b, t, c, lengths, norm, tile_n, c_tile_max)
        (2, 8, 8, (8, 5), "min", 8, 2048),    # multi row-tile accumulation
        (2, 8, 8, (8, 5), "max", 8, 2048),
        (2, 7, 8, (7, 5), "min", 8, 2048),    # N=14 -> padded to 16 rows
        (2, 8, 256, (8, 5), "max", 8, 128),   # vocab tiling: 2 C-tiles of 128
    ]

    ok = True
    for (b, t, c, lengths, norm, tn, ctm) in configs:
        key, sub = jax.random.split(key)
        preds, labels, pad_mask = make_inputs(sub, b, t, c, lengths)
        loss = weighted_cross_entropy(preds, labels, pad_mask, norm=norm,
                                      tile_n=tn, c_tile_max=ctm)
        loss = jax.block_until_ready(loss)
        ref = jax.block_until_ready(_reference(preds, labels, pad_mask, norm))
        if not jnp.allclose(loss, ref, rtol=1e-5, atol=1e-5):
            ok = False
            print(f"MISMATCH b={b} t={t} c={c} norm={norm}: kernel={loss} ref={ref}")

    if ok:
        print("KERNEL_OK")
</pallas_src>

<mosaic_0001>
module attributes {stable_mosaic.version = 11 : i64} {
  func.func @_wce_partial_kernel(%arg0: i32, %arg1: i32, %arg2: memref<8x8xf32, #tpu.memory_space<vmem>>, %arg3: memref<8x1xi32, #tpu.memory_space<vmem>>, %arg4: memref<1x8xf32, #tpu.memory_space<vmem>>, %arg5: memref<1x8xf32, #tpu.memory_space<vmem>>) attributes {dimension_semantics = [#tpu.dimension_semantics<parallel>, #tpu.dimension_semantics<arbitrary>], iteration_bounds = array<i64: 1, 2>, scalar_prefetch = 0 : i64, scratch_operands = 0 : i64, tpu.core_type = #tpu.core_type<tc>, window_params = [{transform_indices = @transform_0, window_bounds = array<i64: 8, 8>}, {transform_indices = @transform_1, window_bounds = array<i64: 8, 1>}, {transform_indices = @transform_2, window_bounds = array<i64: 1, 8>}, {transform_indices = @transform_3, window_bounds = array<i64: 1, 8>}]} {
    %c0_i32 = arith.constant 0 : i32
    %0 = arith.cmpi eq, %arg1, %c0_i32 : i32
    %1 = arith.extui %0 : i1 to i32
    %c0_i32_0 = arith.constant 0 : i32
    %2 = arith.cmpi ne, %1, %c0_i32_0 : i32
    scf.if %2 {
      %cst_15 = arith.constant 0.000000e+00 : f32
      %27 = vector.broadcast %cst_15 : f32 to vector<1x8xf32>
      %c0_16 = arith.constant 0 : index
      %c0_17 = arith.constant 0 : index
      %28 = vector.load %arg4[%c0_16, %c0_17] : memref<1x8xf32, #tpu.memory_space<vmem>>, vector<1x8xf32>
      tpu.vector_store %arg4[%c0_16, %c0_17], %27 {strides = array<i32>} : memref<1x8xf32, #tpu.memory_space<vmem>>, vector<1x8xf32>,
      %cst_18 = arith.constant 0.000000e+00 : f32
      %29 = vector.broadcast %cst_18 : f32 to vector<1x8xf32>
      %c0_19 = arith.constant 0 : index
      %c0_20 = arith.constant 0 : index
      %30 = vector.load %arg5[%c0_19, %c0_20] : memref<1x8xf32, #tpu.memory_space<vmem>>, vector<1x8xf32>
      tpu.vector_store %arg5[%c0_19, %c0_20], %29 {strides = array<i32>} : memref<1x8xf32, #tpu.memory_space<vmem>>, vector<1x8xf32>,
    } else {
    }
    %c0 = arith.constant 0 : index
    %c0_1 = arith.constant 0 : index
    %3 = vector.load %arg2[%c0, %c0_1] : memref<8x8xf32, #tpu.memory_space<vmem>>, vector<8x8xf32>
    %c0_2 = arith.constant 0 : index
    %c0_3 = arith.constant 0 : index
    %4 = vector.load %arg3[%c0_2, %c0_3] : memref<8x1xi32, #tpu.memory_space<vmem>>, vector<8x1xi32>
    %c8_i32 = arith.constant 8 : i32
    %5 = arith.muli %arg0, %c8_i32 : i32
    %6 = tpu.iota {dimensions = array<i32: 1>} : vector<8x8xi32>
    %7 = vector.broadcast %5 : i32 to vector<8x8xi32>
    %8 = arith.addi %7, %6 : vector<8x8xi32>
    %9 = vector.broadcast %4 : vector<8x1xi32> to vector<8x8xi32>
    %10 = arith.cmpi eq, %9, %8 : vector<8x8xi32>
    %c0_4 = arith.constant 0 : index
    %c0_5 = arith.constant 0 : index
    %11 = vector.load %arg4[%c0_4, %c0_5] : memref<1x8xf32, #tpu.memory_space<vmem>>, vector<1x8xf32>
    %12 = arith.extui %10 : vector<8x8xi1> to vector<8x8xi32>
    %13 = arith.sitofp %12 : vector<8x8xi32> to vector<8x8xf32>
    %cst = arith.constant dense<0.000000e+00> : vector<8xf32>
    %14 = vector.multi_reduction <add>, %13, %cst [0] : vector<8x8xf32> to vector<8xf32>
    %15 = vector.shape_cast %14 : vector<8xf32> to vector<1x8xf32>
    %16 = arith.addf %11, %15 : vector<1x8xf32>
    %c0_6 = arith.constant 0 : index
    %c0_7 = arith.constant 0 : index
    %17 = vector.load %arg4[%c0_6, %c0_7] : memref<1x8xf32, #tpu.memory_space<vmem>>, vector<1x8xf32>
    tpu.vector_store %arg4[%c0_6, %c0_7], %16 {strides = array<i32>} : memref<1x8xf32, #tpu.memory_space<vmem>>, vector<1x8xf32>,
    %c0_8 = arith.constant 0 : index
    %c0_9 = arith.constant 0 : index
    %18 = vector.load %arg5[%c0_8, %c0_9] : memref<1x8xf32, #tpu.memory_space<vmem>>, vector<1x8xf32>
    %cst_10 = arith.constant 0.000000e+00 : f32
    %19 = vector.broadcast %cst_10 : f32 to vector<8x8xf32>
    %20 = arith.subf %19, %3 : vector<8x8xf32>
    %cst_11 = arith.constant 0.000000e+00 : f32
    %21 = vector.broadcast %cst_11 : f32 to vector<8x8xf32>
    %22 = arith.select %10, %20, %21 : vector<8x8xi1>, vector<8x8xf32>
    %cst_12 = arith.constant dense<0.000000e+00> : vector<8xf32>
    %23 = vector.multi_reduction <add>, %22, %cst_12 [0] : vector<8x8xf32> to vector<8xf32>
    %24 = vector.shape_cast %23 : vector<8xf32> to vector<1x8xf32>
    %25 = arith.addf %18, %24 : vector<1x8xf32>
    %c0_13 = arith.constant 0 : index
    %c0_14 = arith.constant 0 : index
    %26 = vector.load %arg5[%c0_13, %c0_14] : memref<1x8xf32, #tpu.memory_space<vmem>>, vector<1x8xf32>
    tpu.vector_store %arg5[%c0_13, %c0_14], %25 {strides = array<i32>} : memref<1x8xf32, #tpu.memory_space<vmem>>, vector<1x8xf32>,
    return
  }
  func.func @transform_0(%arg0: i32, %arg1: i32) -> (i32, i32) {
    %c0_i32 = arith.constant 0 : i32
    return %arg1, %arg0 : i32, i32
  }
  func.func @transform_1(%arg0: i32, %arg1: i32) -> (i32, i32) {
    %c0_i32 = arith.constant 0 : i32
    %c0_i32_0 = arith.constant 0 : i32
    return %arg1, %c0_i32 : i32, i32
  }
  func.func @transform_2(%arg0: i32, %arg1: i32) -> (i32, i32) {
    %c0_i32 = arith.constant 0 : i32
    %c0_i32_0 = arith.constant 0 : i32
    return %c0_i32, %arg0 : i32, i32
  }
  func.func @transform_3(%arg0: i32, %arg1: i32) -> (i32, i32) {
    %c0_i32 = arith.constant 0 : i32
    %c0_i32_0 = arith.constant 0 : i32
    return %c0_i32, %arg0 : i32, i32
  }
}

</mosaic_0001>

<bundles_post_ra>
// kernel: tpu_custom_call.1
= control target key start
LH: loop header
LB: loop body
LE: loop exit
PB: predicated region body
PF: predicated region fallthrough
CT: control target
= control target key end

     0   :  { %9 = vsyncpa [#allocation3], 0  ;;  %s604_s0 = inlined_call_operand.vmem [shape: f32[16,8], index: 0, kind: input, shape index: {}]   ;;  %s605_s1 = inlined_call_operand.vmem [shape: s32[16,1], index: 1, kind: input, shape index: {}]   ;;  %s606_s2 = inlined_call_operand.hbm [shape: f32[1,8], index: 2, kind: output, shape index: {0}]   ;;  %s607_s3 = inlined_call_operand.hbm [shape: f32[1,8], index: 3, kind: output, shape index: {1}]  }
   0x1   :  { %10 = vsyncpa [#allocation5], 0  ;;  %s512_s12 = smov 0   ;;  %s514_s13 = smov 0  }
   0x2   :  { %s516_s14 = smov 0  }
   0x3 LB: > { %s347_s15 = sadd.s32 4294967295, %s485_s14   ;;  %s25_s16 = sadd.s32 1, %s481_s13  ;;  %s485_s14 = sphi %s516_s14, %s16_s14   ;;  %s481_s13 = sphi %s514_s13, %s610_s13   ;;  %s477_s12 = sphi %s512_s12, %s609_s12  }
   0x4   : > { %p26_p0 = scmp.ge.s32.totalorder %s25_s16, 2  ;;  %p350_p1 = scmp.ge.s32.totalorder %s485_s14, 1 }
   0x5   : > { %p167_p2 = scmp.lt.s32.totalorder %s485_s14, 3 }
   0x6   : > { %s612_s16 = smov (%p26_p0, %s25_s16), 0 }
   0x7   : > { %p168_p3 = pnand %p350_p1, %p167_p2 }
   0x8   : > { %p192_p4 = scmp.lt.s32.totalorder (!%p168_p3), %s477_s12, 1  ;;  %p353_p5 = scmp.ne.s32.totalorder (!%p168_p3), %s477_s12, 0 }
   0x9   : > { %171 = sbr.rel (%p168_p3) target bundleno = 209 (0xd1), region = 28 }
  0x10   : > { %s193_s17 = scalar_select %p192_p4, %s477_s12, 1 }
  0x11   : > { %206 = sbr.rel (%p353_p5) target bundleno = 24 (0x18), region = 32  ;;  %vm207_vm0 = vcmask (!%p353_p5), 57344   ;;  %v487_v0 = vmov (!%p353_p5), 0.0  }
  0x12   : > { %s351_s18 = sshll.u32 %s193_s17, 3  ;;  %208 = vst.msk [vmem:[#allocation2] sm:$0x1] (!%p353_p5), %vm207_vm0, %v487_v0  ;;  %209 = vst.msk [vmem:[#allocation4] sm:$0x1] (!%p353_p5), %vm207_vm0, %v487_v0 }
  0x13   : > { %s198_s21 = scalar_lea.vmem %s604_s0, %s351_s18  ;;  %s202_s24 = scalar_lea.vmem %s605_s1, %s351_s18 }
  0x18 PF: > { %v211_v1 = vld [vmem:[%s202_s24] sm:$0xff]  ;;  %v488_v2 = vmov 0   ;;  %v213_v3 = vlaneseq  ;;  %vm224_vm1 = vcmask 64512   ;;  %v489_v8 = vmov 0.0   ;;  %s490_s25 = smov [#allocation2]   ;;  %s491_s27 = smov [#allocation4]  }
  0x19   : > { %402 = vset.pattern.permute.xlu0 %v488_v2  ;;  %v210_v4 = vld [vmem:[%s198_s21] sm:$0xff]  ;;  %s256_s26 = sshll.u32 %s490_s25, 4  ;;  %s269_s28 = sshll.u32 %s491_s27, 4  ;;  %vm233_vm3 = vcmask 57344   ;;  %s257_s26 = int_to_ptr.vmem [resolvable:$true] %s256_s26  ;;  %s543_s28 = int_to_ptr.vmem [resolvable:$true] %s269_s28 }
  0x1a   : > { %218 = vperm.xlu0 %402, %v211_v1   ;;  %v214_v5 = vand.u32 127, %v213_v3  ;;  %v236_v6 = vsub.f32 0.0, %v210_v4  ;;  %v221_v23 = vld [vmem:[#allocation2] sm:$0x1]  ;;  %v235_v24 = vld [vmem:[#allocation4] sm:$0x1]  ;;  %p410_p10 = scmp.lt.s32.totalorder %s257_s26, %s257_s26 }
  0x1b   : > { %p539_p6 = scmp.eq.s32.totalorder %s347_s15, 1  ;;  %s403_s30 = scalar_lea.vmem %s257_s26, 16 }
  0x1c   : > { %p404_p7 = scmp.ne.s32.totalorder %s257_s26, %s403_s30  ;;  %s409_s4 = scalar_lea.vmem %s257_s26, 32 }
  0x1d   : > { %p411_p11 = scmp.lt.s32.totalorder %s409_s4, %s403_s30 }
  0x1e   : > { %p405_p8 = pnand %p404_p7, %p539_p6 }
  0x1f   : > { %p412_p12 = por %p411_p11, %p410_p10 }
  0x20   : > { %p406_p9 = pneg %p405_p8 }
  0x22   : > { %p413_p13 = pnand %p412_p12, %p406_p9 }
  0x99   : > { %v219_v7 = vpop.permute.xlu0 %218 }
  0x9a   : > { %vm220_vm2 = vcmp.eq.s32.totalorder %v219_v7, %v214_v5 }
  0x9b   : > { %v354_v9 = vsel %vm220_vm2, 1.0, %v489_v8  ;;  %v237_v10 = vsel %vm220_vm2, %v236_v6, 0.0 }
  0x9c   : > { %v225_v11 = vsel %vm224_vm1, %v354_v9, 0.0  ;;  %v238_v12 = vsel %vm224_vm1, %v237_v10, 0.0 }
  0x9d   : > { %v226_v13 = vrot.slane %v225_v11, 4  ;;  %v239_v14 = vrot.slane %v238_v12, 4 }
  0x9f   : > { %v227_v15 = vadd.f32 %v226_v13, %v225_v11  ;;  %v240_v16 = vadd.f32 %v239_v14, %v238_v12 }
  0xa1   : > { %v228_v17 = vrot.slane %v227_v15, 2  ;;  %v241_v18 = vrot.slane %v240_v16, 2 }
  0xa3   : > { %v229_v19 = vadd.f32 %v228_v17, %v227_v15  ;;  %v242_v20 = vadd.f32 %v241_v18, %v240_v16 }
  0xa5   : > { %v230_v21 = vrot.slane %v229_v19, 1  ;;  %v243_v22 = vrot.slane %v242_v20, 1 }
  0xa7   : > { %v231_v25 = vadd.f32 %v230_v21, %v229_v19  ;;  %v244_v26 = vadd.f32 %v243_v22, %v242_v20 }
  0xa9   : > { %v232_v27 = vadd.f32 %v231_v25, %v221_v23  ;;  %v245_v28 = vadd.f32 %v244_v26, %v235_v24 }
  0xab   : > { %234 = vst.msk [vmem:[#allocation2] sm:$0x1] %vm233_vm3, %v232_v27  ;;  %246 = vst.msk [vmem:[#allocation4] sm:$0x1] %vm233_vm3, %v245_v28 }
  0xac   : > { %416 = shalt.err (!%p413_p13)
}
  0xad   : > { %s417_s7 = scalar_lea.hbm %s606_s2, 16 }
  0xae   : > { %p418_p0 = scmp.ne.s32.totalorder %s606_s2, %s417_s7  ;;  %p423_p3 = scmp.lt.u32.totalorder %s417_s7, %s606_s2 }
  0xb0   : > { %p419_p1 = pnand %p418_p0, %p539_p6 }
  0xb2   : > { %p420_p2 = pneg %p419_p1 }
  0xb4   : > { %p425_p4 = pnand %p423_p3, %p420_p2 }
  0xb6   : > { %428 = shalt.err (!%p425_p4)
}
  0xb7   : > { %362 = dma.vmem_to_hbm [thread:$0]  (%p539_p6), %s257_s26, 16, %s606_s2, [#allocation3]  }
  0xb8   : > { %s429_s17 = scalar_lea.vmem %s543_s28, 16  ;;  %s435_s18 = scalar_lea.vmem %s543_s28, 32 }
  0xb9   : > { %p430_p5 = scmp.ne.s32.totalorder %s543_s28, %s429_s17  ;;  %p436_p9 = scmp.lt.s32.totalorder %s543_s28, %s543_s28 }
  0xba   : > { %p437_p10 = scmp.lt.s32.totalorder %s435_s18, %s429_s17 }
  0xbb   : > { %p431_p7 = pnand %p430_p5, %p539_p6 }
  0xbc   : > { %p438_p11 = por %p437_p10, %p436_p9 }
  0xbd   : > { %p432_p8 = pneg %p431_p7 }
  0xbf   : > { %p439_p12 = pnand %p438_p11, %p432_p8 }
  0xc1   : > { %442 = shalt.err (!%p439_p12)
}
  0xc2   : > { %s443_s21 = scalar_lea.hbm %s607_s3, 16 }
  0xc3   : > { %p444_p13 = scmp.ne.s32.totalorder %s607_s3, %s443_s21  ;;  %p449_p2 = scmp.lt.u32.totalorder %s443_s21, %s607_s3 }
  0xc5   : > { %p445_p0 = pnand %p444_p13, %p539_p6 }
  0xc7   : > { %p446_p1 = pneg %p445_p0 }
  0xc9   : > { %p451_p3 = pnand %p449_p2, %p446_p1 }
  0xcb   : > { %454 = shalt.err (!%p451_p3)
}
  0xcc   : > { %364 = dma.vmem_to_hbm [thread:$0]  (%p539_p6), %s543_s28, 16, %s607_s3, [#allocation5]  }
  0xcd   : > { %468 = dma.done.wait (%p539_p6), [#allocation3], 16  }
  0xce   : > { %470 = vsyncadd (%p539_p6), [#allocation3], 4294967280 }
  0xcf   : > { %472 = dma.done.wait (%p539_p6), [#allocation5], 16  }
  0xd0   : > { %474 = vsyncadd (%p539_p6), [#allocation5], 4294967280 }
  0xd1 PF: > { %s16_s14 = sadd.s32 1, %s485_s14   ;;  %s609_s12 = smov %s481_s13 }
  0xd2   : > { %p13_p4 = scmp.ge.s32.totalorder %s16_s14, 4   ;;  %s610_s13 = smov %s612_s16 }
  0xd4   :  { %15 = sbr.rel (!%p13_p4) target bundleno = 3 (0x3), region = 72 }
  0xdb   :  { %286 = vsyncpa [#allocation3], 1 }
  0xdc   :  { %288 = vsyncpa [#allocation3 + $0x1], 1 }
  0xdd   :  { %289 = vsyncpa [#allocation5], 1 }

</bundles_post_ra>
